<compile_context>
chip_gen: v7x
topology: tpu7x:2x2x1
jax: 0.10.0
libtpu: 0.0.40
codegen_flags: <defaults>
</compile_context>

<pallas_src>
import functools

import jax
import jax.numpy as jnp
from jax import lax
from jax.experimental import pallas as pl
from jax.experimental.pallas import tpu as pltpu


# ----------------------------- helpers ----------------------------------------

def _round_up(x, m):
    return ((x + m - 1) // m) * m


def _vmem_limit_bytes():
    # Per-generation VMEM limit: ~75% of physical capacity, capped at 100 MiB
    # (=> ~96 MiB on v5e/v6e's 128 MiB, ~48 MiB on v7x's 64 MiB).
    try:
        cap = int(pltpu.get_tpu_info().vmem_capacity_bytes)
    except Exception:
        cap = 64 * 1024 * 1024
    return max(32 * 1024 * 1024, min(cap * 3 // 4, 100 * 1024 * 1024))


def _pick_m_tile(M, E, itemsize, vmem_budget):
    """M-tile for the projection GEMM, capped by a VMEM budget (double-buffered
    x block + resident (E,3E) weight + double-buffered (3,tm,E) output)."""
    if M <= 128:
        return _round_up(M, 8)
    for tm in (1024, 512, 256, 128):
        need = itemsize * (2 * tm * E + 2 * E * 3 * E + 2 * 3 * tm * E)
        if need <= vmem_budget:
            return tm
    return 128


def _pick_q_tile(T):
    for tq in (256, 128, 64, 32, 16, 8):
        if T % tq == 0:
            return tq
    # TODO(synk): pad tgt_len for sequence lengths not divisible by 8.
    return T


# ----------------------------- kernels ----------------------------------------

def qkv_proj_kernel(x_ref, w_ref, b_ref, qkv_ref, *, embed_dim, compute_dtype):
    # x_ref: (tm, E); w_ref: (E, 3E) pre-transposed, q-scaling folded; b_ref: (1, 3E)
    # qkv_ref: (3, tm, E) -> [q | k | v] stacked on the leading axis.
    E = embed_dim
    x = x_ref[...].astype(compute_dtype)
    w = w_ref[...].astype(compute_dtype)
    y = jnp.dot(x, w, preferred_element_type=jnp.float32)          # f32 accumulation
    y = y + b_ref[...].astype(jnp.float32)
    qkv_ref[0] = y[:, :E].astype(qkv_ref.dtype)
    qkv_ref[1] = y[:, E:2 * E].astype(qkv_ref.dtype)
    qkv_ref[2] = y[:, 2 * E:].astype(qkv_ref.dtype)
    # NOTE(v7x): the (E,3E) weight block is still double-buffered by the pipeline even
    # though its block index is constant; if its 2x footprint matters, tile the 3E axis
    # (grid=(Mp//tm, 3) with a stacked (3,E,E) weight) or single-buffer it.


def attn_out_kernel(q_ref, k_ref, v_ref, mask_ref, wo_ref, bo_ref, o_ref, acc_ref,
                    *, num_heads, head_dim, compute_dtype):
    # q_ref: (1, tq, E); k_ref/v_ref: (1, S, E) (resident per batch row);
    # mask_ref: (1, tq, S) full additive mask or (1, 1, S) compact key-padding mask;
    # wo_ref: (E, E) pre-transposed; bo_ref: (1, E);
    # o_ref: (tq, E); acc_ref: (tq, E) f32 VMEM scratch (head accumulator).
    H, Dh = num_heads, head_dim
    q = q_ref[0]                                 # (tq, E), q already scaled
    k = k_ref[0]                                 # (S, E)
    v = v_ref[0]                                 # (S, E)
    mask = mask_ref[0].astype(jnp.float32)       # (tq, S) or (1, S) -> row-broadcast

    # Static per-head loop (H is compile-time).  Each head's (tq,S) score temporary is
    # consumed immediately into the f32 VMEM accumulator, and query tiling bounds its
    # size, so live-range growth across the unrolled heads stays small.
    # TODO(synk): for very large H, a head-major (H, M, Dh) layout + fori_loop would
    # bound the working set to exactly one head.
    for h in range(H):
        lo = h * Dh
        qh = q[:, lo:lo + Dh].astype(compute_dtype)                 # (tq, Dh)
        kh = k[:, lo:lo + Dh].astype(compute_dtype)                 # (S, Dh)
        vh = v[:, lo:lo + Dh].astype(compute_dtype)                 # (S, Dh)
        # scores = q @ k^T without an explicit K transpose (contracting dims).
        s = lax.dot_general(qh, kh, (((1,), (1,)), ((), ())),
                            preferred_element_type=jnp.float32)     # (tq, S)
        s = s + mask
        s = s - jnp.max(s, axis=-1, keepdims=True)
        p = jnp.exp(s)
        p = p / jnp.sum(p, axis=-1, keepdims=True)                  # exact softmax
        acc_ref[:, lo:lo + Dh] = jnp.dot(p.astype(compute_dtype), vh,
                                         preferred_element_type=jnp.float32)

    # Fused out_proj: one (tq,E)@(E,E) MXU matmul + bias, single lane-dense store.
    y = jnp.dot(acc_ref[...].astype(compute_dtype), wo_ref[...].astype(compute_dtype),
                preferred_element_type=jnp.float32)
    o_ref[...] = (y + bo_ref[...].astype(jnp.float32)).astype(o_ref.dtype)


# ----------------------------- wrapper -----------------------------------------

def prepare_bart_attention_params(params, num_heads, dtype=None):
    """One-time weight preparation (hoisted out of the per-call forward path).

    PyTorch Linear computes y = x @ W^T + b, so weights are pre-transposed; Q/K/V are
    fused into one (E, 3E) matrix and the 1/sqrt(head_dim) query scaling is folded into
    the q weight/bias.  Optionally casts the prepared weights to `dtype` (e.g. bf16)."""
    wq, bq = params["q_proj"]
    wk, bk = params["k_proj"]
    wv, bv = params["v_proj"]
    wo, bo = params["out_proj"]
    E = wq.shape[0]
    Dh = E // num_heads
    scaling = Dh ** (-0.5)

    w_qkv = jnp.concatenate([wq.T * scaling, wk.T, wv.T], axis=1)        # (E, 3E)
    b_qkv = jnp.concatenate([bq * scaling, bk, bv]).reshape(1, 3 * E)    # (1, 3E)
    wo_t = wo.T                                                          # (E, E)
    bo_r = bo.reshape(1, E)                                              # (1, E)
    if dtype is not None:
        w_qkv, b_qkv, wo_t, bo_r = (a.astype(dtype) for a in (w_qkv, b_qkv, wo_t, bo_r))
    return {"w_qkv": w_qkv, "b_qkv": b_qkv, "wo_t": wo_t, "bo_r": bo_r,
            "num_heads": num_heads, "head_dim": Dh, "embed_dim": E}


def bart_attention(hidden_states, attention_mask, prepared, compute_dtype=None):
    """Self-attention path of BartAttention (no cross-attn, no past_key_value,
    output_attentions=False, eval mode so dropout is identity).

    attention_mask: additive mask of shape (B, 1, T, S) (module contract) or the
    compact broadcastable form (B, 1, 1, S), or None."""
    B, T, E = hidden_states.shape
    assert E == prepared["embed_dim"]
    H, Dh = prepared["num_heads"], prepared["head_dim"]
    S = T                      # self-attention: src_len == tgt_len
    M = B * T
    dt = hidden_states.dtype
    if compute_dtype is None:
        compute_dtype = dt
    act_isz = jnp.dtype(dt).itemsize
    w_isz = jnp.dtype(prepared["w_qkv"].dtype).itemsize
    vmem_limit = _vmem_limit_bytes()

    w_qkv, b_qkv = prepared["w_qkv"], prepared["b_qkv"]
    wo_t, bo_r = prepared["wo_t"], prepared["bo_r"]

    # ---- fused Q/K/V projection: [Mp, E] @ [E, 3E] -> (3, Mp, E) -------------------
    tm = _pick_m_tile(M, E, max(act_isz, w_isz), vmem_limit * 3 // 4)
    M_pad = _round_up(M, tm)
    x2d = hidden_states.reshape(M, E)                 # free view
    if M_pad != M:
        x2d = jnp.pad(x2d, ((0, M_pad - M), (0, 0)))  # padded rows are never read back

    qkv_store_dtype = compute_dtype                   # bf16 intermediates when requested
    qkv_isz = jnp.dtype(qkv_store_dtype).itemsize

    qkv3 = pl.pallas_call(
        functools.partial(qkv_proj_kernel, embed_dim=E, compute_dtype=compute_dtype),
        out_shape=jax.ShapeDtypeStruct((3, M_pad, E), qkv_store_dtype),
        grid_spec=pltpu.PrefetchScalarGridSpec(
            num_scalar_prefetch=0,
            grid=(M_pad // tm,),
            in_specs=[pl.BlockSpec((tm, E), lambda i: (i, 0)),
                      pl.BlockSpec((E, 3 * E), lambda i: (0, 0)),
                      pl.BlockSpec((1, 3 * E), lambda i: (0, 0))],
            out_specs=pl.BlockSpec((3, tm, E), lambda i: (0, i, 0)),
        ),
        compiler_params=pltpu.CompilerParams(
            dimension_semantics=("parallel",),
            vmem_limit_bytes=vmem_limit),
        cost_estimate=pl.CostEstimate(
            flops=2 * M_pad * E * 3 * E,
            transcendentals=0,
            bytes_accessed=act_isz * M_pad * E + w_isz * (3 * E * E + 3 * E)
                           + qkv_isz * 3 * M_pad * E),
    )(x2d, w_qkv, b_qkv)

    # ---- attention + fused out_proj: grid over (batch, query tiles) ----------------
    tq = _pick_q_tile(T)
    n_q = T // tq

    if attention_mask is None:
        mask_arr = jnp.zeros((B, 1, S), jnp.float32)
        mask_spec = pl.BlockSpec((1, 1, S), lambda b, qi: (b, 0, 0))
    else:
        am = attention_mask
        assert am.ndim == 4 and am.shape[0] == B and am.shape[1] == 1 and am.shape[3] == S, (
            f"attention_mask must be (bsz, 1, tgt_len|1, src_len), got {am.shape}")
        if am.shape[2] == 1:
            # Compact key-padding mask: broadcast over query rows inside the kernel
            # (S x less mask HBM traffic than the fully expanded (B,T,S) mask).
            mask_arr = am.reshape(B, 1, S)
            mask_spec = pl.BlockSpec((1, 1, S), lambda b, qi: (b, 0, 0))
        else:
            assert am.shape[2] == T
            mask_arr = am.reshape(B, T, S)
            mask_spec = pl.BlockSpec((1, tq, S), lambda b, qi: (b, qi, 0))
    mask_bytes = mask_arr.size * jnp.dtype(mask_arr.dtype).itemsize

    out2d = pl.pallas_call(
        functools.partial(attn_out_kernel, num_heads=H, head_dim=Dh,
                          compute_dtype=compute_dtype),
        out_shape=jax.ShapeDtypeStruct((M, E), dt),
        grid_spec=pltpu.PrefetchScalarGridSpec(
            num_scalar_prefetch=0,
            grid=(B, n_q),
            in_specs=[pl.BlockSpec((1, tq, E), lambda b, qi: (0, b * n_q + qi, 0)),  # q tile
                      pl.BlockSpec((1, S, E), lambda b, qi: (1, b, 0)),              # K (per b)
                      pl.BlockSpec((1, S, E), lambda b, qi: (2, b, 0)),              # V (per b)
                      mask_spec,
                      pl.BlockSpec((E, E), lambda b, qi: (0, 0)),                    # Wo^T
                      pl.BlockSpec((1, E), lambda b, qi: (0, 0))],                   # bo
            out_specs=pl.BlockSpec((tq, E), lambda b, qi: (b * n_q + qi, 0)),
            scratch_shapes=[pltpu.VMEM((tq, E), jnp.float32)],
        ),
        compiler_params=pltpu.CompilerParams(
            dimension_semantics=("parallel", "parallel"),
            vmem_limit_bytes=vmem_limit),
        cost_estimate=pl.CostEstimate(
            flops=4 * B * T * S * E + 2 * M * E * E,
            transcendentals=B * H * T * S,
            bytes_accessed=qkv_isz * 3 * M * E + mask_bytes
                           + w_isz * (E * E + E) + act_isz * M * E),
    )(qkv3, qkv3, qkv3, mask_arr, wo_t, bo_r)

    # attn_weights_reshaped is None (output_attentions=False);
    # past_key_value only returned when is_decoder=True.
    return out2d.reshape(B, T, E), None, None


# ----------------------------- reference (pure JAX) ----------------------------

def bart_attention_ref(hidden_states, attention_mask, params, num_heads):
    B, T, E = hidden_states.shape
    H = num_heads
    Dh = E // H
    scaling = Dh ** (-0.5)

    def lin(x, wb):
        w, b = wb
        return x @ w.T + b

    q = lin(hidden_states, params["q_proj"]) * scaling
    k = lin(hidden_states, params["k_proj"])
    v = lin(hidden_states, params["v_proj"])

    def to_heads(x):
        return x.reshape(B, T, H, Dh).transpose(0, 2, 1, 3).reshape(B * H, T, Dh)

    qh, kh, vh = to_heads(q), to_heads(k), to_heads(v)
    w = jnp.einsum("btd,bsd->bts", qh, kh)
    w = (w.reshape(B, H, T, T) + attention_mask).reshape(B * H, T, T)
    w = jax.nn.softmax(w, axis=-1)
    o = jnp.einsum("bts,bsd->btd", w, vh)
    o = o.reshape(B, H, T, Dh).transpose(0, 2, 1, 3).reshape(B, T, E)
    return lin(o, params["out_proj"])


# ----------------------------- main --------------------------------------------

if __name__ == "__main__":
    B, T, E, H = 2, 8, 32, 4

    key = jax.random.PRNGKey(0)
    keys = jax.random.split(key, 10)

    def init_linear(kw, kb):
        w = jax.random.normal(kw, (E, E), jnp.float32) * 0.02
        b = jax.random.normal(kb, (E,), jnp.float32) * 0.02
        return (w, b)

    params = {
        "q_proj": init_linear(keys[0], keys[1]),
        "k_proj": init_linear(keys[2], keys[3]),
        "v_proj": init_linear(keys[4], keys[5]),
        "out_proj": init_linear(keys[6], keys[7]),
    }
    hidden_states = jax.random.normal(keys[8], (B, T, E), jnp.float32)

    # Key-padding mask: last two source positions of batch 1 are masked out.
    key_pad = jnp.zeros((B, T), jnp.float32).at[1, -2:].set(1.0)
    mask_compact = key_pad[:, None, None, :] * -1e9                    # (B, 1, 1, S)
    mask_full = jnp.broadcast_to(mask_compact, (B, 1, T, T))           # (B, 1, T, S)

    # One-time weight preparation (hoisted out of the forward path).
    prepared_f32 = prepare_bart_attention_params(params, H)

    # (1) Spec-faithful config: full (B,1,T,S) mask, f32 MXU operands.
    out, attn_w, past_kv = bart_attention(hidden_states, mask_full, prepared_f32)
    out = jax.block_until_ready(out)
    ref = bart_attention_ref(hidden_states, mask_full, params, H)
    assert out.shape == (B, T, E)
    assert attn_w is None and past_kv is None
    assert jnp.allclose(out, ref, atol=1e-3, rtol=1e-3), "f32 path mismatch vs reference"

    # (2) Optimized config: compact (B,1,1,S) mask + bf16 MXU operands (f32 accumulation).
    prepared_bf16 = prepare_bart_attention_params(params, H, dtype=jnp.bfloat16)
    out_bf16, _, _ = bart_attention(hidden_states, mask_compact, prepared_bf16,
                                    compute_dtype=jnp.bfloat16)
    out_bf16 = jax.block_until_ready(out_bf16)
    assert jnp.allclose(out_bf16, ref, atol=2e-2, rtol=2e-2), "bf16 path mismatch vs reference"

    print("KERNEL_OK")
</pallas_src>

<mosaic_0001>
module attributes {stable_mosaic.version = 11 : i64} {
  func.func @qkv_proj_kernel(%arg0: i32, %arg1: memref<16x32xf32, #tpu.memory_space<vmem>>, %arg2: memref<32x96xf32, #tpu.memory_space<vmem>>, %arg3: memref<1x96xf32, #tpu.memory_space<vmem>>, %arg4: memref<3x16x32xf32, #tpu.memory_space<vmem>>) attributes {dimension_semantics = [#tpu.dimension_semantics<parallel>], iteration_bounds = array<i64: 1>, scalar_prefetch = 0 : i64, scratch_operands = 0 : i64, tpu.core_type = #tpu.core_type<tc>, window_params = [{transform_indices = @transform_0, window_bounds = array<i64: 16, 32>}, {pipeline_mode = #tpu.pipeline_mode<synchronous>, transform_indices = @transform_1, window_bounds = array<i64: 32, 96>}, {pipeline_mode = #tpu.pipeline_mode<synchronous>, transform_indices = @transform_2, window_bounds = array<i64: 1, 96>}, {transform_indices = @transform_3, window_bounds = array<i64: 3, 16, 32>}]} {
    %c0 = arith.constant 0 : index
    %c0_0 = arith.constant 0 : index
    %0 = vector.load %arg1[%c0, %c0_0] : memref<16x32xf32, #tpu.memory_space<vmem>>, vector<16x32xf32>
    %c0_1 = arith.constant 0 : index
    %c0_2 = arith.constant 0 : index
    %1 = vector.load %arg2[%c0_1, %c0_2] : memref<32x96xf32, #tpu.memory_space<vmem>>, vector<32x96xf32>
    %cst = arith.constant dense<0.000000e+00> : vector<16x96xf32>
    %2 = tpu.matmul %0, %1, %cst {dimension_numbers = #tpu.dot_dimension_numbers<[1], [0], [0], [1], [0, 0, 1, 1], [], []>} : vector<16x32xf32>, vector<32x96xf32>, vector<16x96xf32> -> vector<16x96xf32>
    %c0_3 = arith.constant 0 : index
    %c0_4 = arith.constant 0 : index
    %3 = vector.load %arg3[%c0_3, %c0_4] : memref<1x96xf32, #tpu.memory_space<vmem>>, vector<1x96xf32>
    %4 = vector.broadcast %3 : vector<1x96xf32> to vector<16x96xf32>
    %5 = arith.addf %2, %4 : vector<16x96xf32>
    %6 = vector.extract_strided_slice %5 {offsets = [0, 0], sizes = [16, 32], strides = [1, 1]} : vector<16x96xf32> to vector<16x32xf32>
    %c0_5 = arith.constant 0 : index
    %c0_6 = arith.constant 0 : index
    %c0_7 = arith.constant 0 : index
    %7 = vector.load %arg4[%c0_5, %c0_6, %c0_7] : memref<3x16x32xf32, #tpu.memory_space<vmem>>, vector<1x16x32xf32>
    %8 = vector.shape_cast %7 : vector<1x16x32xf32> to vector<16x32xf32>
    %9 = vector.shape_cast %6 : vector<16x32xf32> to vector<1x16x32xf32>
    tpu.vector_store %arg4[%c0_5, %c0_6, %c0_7], %9 {strides = array<i32>} : memref<3x16x32xf32, #tpu.memory_space<vmem>>, vector<1x16x32xf32>,
    %10 = vector.extract_strided_slice %5 {offsets = [0, 32], sizes = [16, 32], strides = [1, 1]} : vector<16x96xf32> to vector<16x32xf32>
    %c1 = arith.constant 1 : index
    %c0_8 = arith.constant 0 : index
    %c0_9 = arith.constant 0 : index
    %11 = vector.load %arg4[%c1, %c0_8, %c0_9] : memref<3x16x32xf32, #tpu.memory_space<vmem>>, vector<1x16x32xf32>
    %12 = vector.shape_cast %11 : vector<1x16x32xf32> to vector<16x32xf32>
    %13 = vector.shape_cast %10 : vector<16x32xf32> to vector<1x16x32xf32>
    tpu.vector_store %arg4[%c1, %c0_8, %c0_9], %13 {strides = array<i32>} : memref<3x16x32xf32, #tpu.memory_space<vmem>>, vector<1x16x32xf32>,
    %14 = vector.extract_strided_slice %5 {offsets = [0, 64], sizes = [16, 32], strides = [1, 1]} : vector<16x96xf32> to vector<16x32xf32>
    %c2 = arith.constant 2 : index
    %c0_10 = arith.constant 0 : index
    %c0_11 = arith.constant 0 : index
    %15 = vector.load %arg4[%c2, %c0_10, %c0_11] : memref<3x16x32xf32, #tpu.memory_space<vmem>>, vector<1x16x32xf32>
    %16 = vector.shape_cast %15 : vector<1x16x32xf32> to vector<16x32xf32>
    %17 = vector.shape_cast %14 : vector<16x32xf32> to vector<1x16x32xf32>
    tpu.vector_store %arg4[%c2, %c0_10, %c0_11], %17 {strides = array<i32>} : memref<3x16x32xf32, #tpu.memory_space<vmem>>, vector<1x16x32xf32>,
    return
  }
  func.func @transform_0(%arg0: i32) -> (i32, i32) {
    %c0_i32 = arith.constant 0 : i32
    %c0_i32_0 = arith.constant 0 : i32
    return %arg0, %c0_i32 : i32, i32
  }
  func.func @transform_1(%arg0: i32) -> (i32, i32) {
    %c0_i32 = arith.constant 0 : i32
    %c0_i32_0 = arith.constant 0 : i32
    %c0_i32_1 = arith.constant 0 : i32
    return %c0_i32, %c0_i32_0 : i32, i32
  }
  func.func @transform_2(%arg0: i32) -> (i32, i32) {
    %c0_i32 = arith.constant 0 : i32
    %c0_i32_0 = arith.constant 0 : i32
    %c0_i32_1 = arith.constant 0 : i32
    return %c0_i32, %c0_i32_0 : i32, i32
  }
  func.func @transform_3(%arg0: i32) -> (i32, i32, i32) {
    %c0_i32 = arith.constant 0 : i32
    %c0_i32_0 = arith.constant 0 : i32
    %c0_i32_1 = arith.constant 0 : i32
    return %c0_i32, %arg0, %c0_i32_0 : i32, i32, i32
  }
}

</mosaic_0001>

<bundles_post_ra>
// kernel: tpu_custom_call.1
= control target key start
LH: loop header
LB: loop body
LE: loop exit
PB: predicated region body
PF: predicated region fallthrough
CT: control target
= control target key end

     0   :  { %8 = vsyncpa [#allocation3], 0  ;;  %s368_s0 = inlined_call_operand.hbm [shape: f32[16,32], index: 0, kind: input, shape index: {}]   ;;  %s369_s1 = inlined_call_operand.hbm [shape: f32[32,96], index: 1, kind: input, shape index: {}]   ;;  %s370_s2 = inlined_call_operand.vmem [shape: f32[1,96], index: 2, kind: input, shape index: {}]   ;;  %s371_s3 = inlined_call_operand.hbm [shape: f32[3,16,32], index: 3, kind: output, shape index: {}]  }
   0x1   :  { %9 = vsyncpa [#allocation6], 0 }
   0x2   :  { %10 = vsyncpa [#allocation4], 0  ;;  %s285_s12 = smov [#allocation2]   ;;  %s213_s16 = scalar_lea.hbm %s368_s0, 256 }
   0x3   :  { %s16_s13 = sshll.u32 %s285_s12, 4  ;;  %p214_p0 = scmp.ne.s32.totalorder %s368_s0, %s213_s16  ;;  %s17_s13 = int_to_ptr.vmem [resolvable:$true] %s16_s13 }
   0x4   :  { %p217_p1 = scmp.lt.u32.totalorder %s213_s16, %s368_s0 }
   0x6   :  { %p219_p2 = pnand %p217_p1, %p214_p0 }
   0x8   :  { %222 = shalt.err (!%p219_p2)
}
   0x9   :  { %s223_s21 = scalar_lea.vmem %s17_s13, 256  ;;  %p228_p4 = scmp.lt.s32.totalorder %s17_s13, %s17_s13 }
   0xa   :  { %p224_p3 = scmp.ne.s32.totalorder %s17_s13, %s223_s21  ;;  %p229_p5 = scmp.lt.s32.totalorder %s223_s21, %s223_s21 }
   0xc   :  { %p230_p6 = por %p229_p5, %p228_p4 }
   0xe   :  { %p231_p7 = pnand %p230_p6, %p224_p3 }
  0x10   :  { %234 = shalt.err (!%p231_p7)
}
  0x11   :  { %s286_s22 = smov 128   ;;  %s287_s23 = smov 8  }
  0x12   :  { %22 = dma.hbm_to_vmem [thread:$0]  %s368_s0, 256, %s17_s13, [#allocation3], %s286_s22, %s286_s22, %s287_s23  }
  0x13   :  { %s288_s26 = smov [#allocation5]   ;;  %s235_s30 = scalar_lea.hbm %s369_s1, 512 }
  0x14   :  { %s28_s27 = sshll.u32 %s288_s26, 4  ;;  %p236_p8 = scmp.ne.s32.totalorder %s369_s1, %s235_s30  ;;  %s29_s27 = int_to_ptr.vmem [resolvable:$true] %s28_s27 }
  0x15   :  { %p239_p9 = scmp.lt.u32.totalorder %s235_s30, %s369_s1 }
  0x17   :  { %p241_p10 = pnand %p239_p9, %p236_p8 }
  0x19   :  { %244 = shalt.err (!%p241_p10)
}
  0x1a   :  { %s245_s8 = scalar_lea.vmem %s29_s27, 512  ;;  %p250_p12 = scmp.lt.s32.totalorder %s29_s27, %s29_s27 }
  0x1b   :  { %p246_p11 = scmp.ne.s32.totalorder %s29_s27, %s245_s8  ;;  %p251_p13 = scmp.lt.s32.totalorder %s245_s8, %s245_s8 }
  0x1d   :  { %p252_p0 = por %p251_p13, %p250_p12 }
  0x1f   :  { %p253_p1 = pnand %p252_p0, %p246_p11 }
  0x21   :  { %256 = shalt.err (!%p253_p1)
}
  0x22   :  { %34 = dma.hbm_to_vmem [thread:$0]  %s369_s1, 512, %s29_s27, [#allocation6], %s286_s22, %s286_s22, %s287_s23  }
  0x23   :  { %279 = dma.done.wait [#allocation3], 256  }
  0x24   :  { %280 = vsyncadd [#allocation3], 4294967040 }
  0x25   :  { %281 = dma.done.wait [#allocation6], 512  }
  0x26   :  { %282 = vsyncadd [#allocation6], 4294966784  ;;  %vm56_vm0 = vcmask 261120   ;;  %v45_v0 = vld [vmem:[#allocation5] sm:$0xff]  ;;  %v46_v1 = vld [vmem:[#allocation5 + $0x8] sm:$0xff]  ;;  %s289_s11 = smov 64  }
  0x27   :  { %v47_v2 = vld [vmem:[#allocation5 + $0x10] sm:$0xff]  ;;  %v198_v3 = vpack.c.bf16 %v46_v1, %v45_v0  ;;  %v48_v4 = vld [vmem:[#allocation5 + $0x18] sm:$0xff]  ;;  %s290_s12 = smov 96   ;;  %s291_s13 = smov [#allocation7]  }
  0x28   :  { %v43_v5 = vld [vmem:[#allocation2] sm:$0xff]  ;;  %v202_v6 = vpack.c.bf16 %v48_v4, %v47_v2  ;;  %v44_v7 = vld [vmem:[#allocation2 + $0x8] sm:$0xff]  ;;  %s165_s14 = sshll.u32 %s291_s13, 4  ;;  %s166_s14 = int_to_ptr.vmem [resolvable:$true] %s165_s14 }
  0x29   :  { %195 = vmatprep.mubr.msk.f32.mxu0 %vm56_vm0, %v43_v5  ;;  %199 = vmatprep.subr.bf16.mxu0 %v198_v3  ;;  %v178_v8 = vld [vmem:[%s370_s2] ss:$0 sm:$0xff]  ;;  %s257_s2 = scalar_lea.vmem %s166_s14, 768  ;;  %p262_p3 = scmp.lt.s32.totalorder %s166_s14, %s166_s14 }
  0x2a   :  { %201 = vmatpush3.bf16.msra.mxu0 %v198_v3  ;;  %p258_p2 = scmp.ne.s32.totalorder %s166_s14, %s257_s2  ;;  %p263_p4 = scmp.lt.s32.totalorder %s257_s2, %s257_s2 }
  0x2b   :  { %203 = vmatprep.subr.bf16.mxu0 %v202_v6 }
  0x2c   :  { %p264_p5 = por %p263_p4, %p262_p3 }
  0x2e   :  { %205 = vmatpush3.bf16.msra.mxu0 %v202_v6  ;;  %p265_p6 = pnand %p264_p5, %p258_p2 }
  0x31   :  { %196 = vmatmul.mubr.msk.f32.vlgmr.msra.gmra.mrb[0].mxu0 %vm56_vm0, %v44_v7 }
 0x104   :  { %v197_v9 = vpop.f32.mrb[0].mxu0 }
 0x105   :  { %v135_v10 = vadd.f32 %v197_v9, %v178_v8  ;;  %v129_v11 = vpop.f32.mrb[1].mxu0 }
 0x106   :  { %v130_v12 = vadd.f32 %v178_v8, %v129_v11 }
 0x107   :  { %139 = vst.msk [vmem:[#allocation7 + $0x8] sm:$0xff] %vm56_vm0, %v135_v10 }
 0x108   :  { %138 = vst.msk [vmem:[#allocation7] sm:$0xff] %vm56_vm0, %v130_v12  ;;  %151 = vrot.lane.b32.xlu1 %v130_v12, %s289_s11  ;;  %142 = vrot.lane.b32.xlu0 %v130_v12, %s290_s12 }
 0x10c   :  { %153 = vrot.lane.b32.xlu1 %v135_v10, %s289_s11  ;;  %144 = vrot.lane.b32.xlu0 %v135_v10, %s290_s12 }
 0x17a   :  { %v152_v13 = vpop.permute.xlu1 %151  ;;  %v143_v14 = vpop.permute.xlu0 %142 }
 0x17b   :  { %158 = vst.msk [vmem:[#allocation7 + $0x20] sm:$0xff] %vm56_vm0, %v152_v13  ;;  %149 = vst.msk [vmem:[#allocation7 + $0x10] sm:$0xff] %vm56_vm0, %v143_v14 }
 0x17e   :  { %v154_v15 = vpop.permute.xlu1 %153  ;;  %v145_v16 = vpop.permute.xlu0 %144 }
 0x17f   :  { %159 = vst.msk [vmem:[#allocation7 + $0x28] sm:$0xff] %vm56_vm0, %v154_v15  ;;  %150 = vst.msk [vmem:[#allocation7 + $0x18] sm:$0xff] %vm56_vm0, %v145_v16 }
 0x180   :  { %268 = shalt.err (!%p265_p6)
}
 0x181   :  { %s269_s17 = scalar_lea.hbm %s371_s3, 768 }
 0x182   :  { %p270_p7 = scmp.ne.s32.totalorder %s371_s3, %s269_s17  ;;  %p273_p8 = scmp.lt.u32.totalorder %s269_s17, %s371_s3 }
 0x184   :  { %p275_p9 = pnand %p273_p8, %p270_p7 }
 0x186   :  { %278 = shalt.err (!%p275_p9)
}
 0x187   :  { %171 = dma.vmem_to_hbm [thread:$0]  %s166_s14, 768, %s371_s3, [#allocation4], %s286_s22, %s286_s22, %s287_s23  }
 0x188   :  { %283 = dma.done.wait [#allocation4], 768  }
 0x189   :  { %284 = vsyncadd [#allocation4], 4294966528 }
 0x18a   :  { %175 = vsyncpa [#allocation3], 1 }
 0x18b   :  { %176 = vsyncpa [#allocation6], 1 }
 0x18c   :  { %177 = vsyncpa [#allocation4], 1 }

</bundles_post_ra>
